<compile_context>
chip_gen: v6e
topology: v6e:2x2x1
jax: 0.10.0
libtpu: 0.0.40
codegen_flags: <defaults>
</compile_context>

<pallas_src>
import functools
import math

import jax
import jax.numpy as jnp
from jax import lax
from jax.experimental import pallas as pl
from jax.experimental.pallas import tpu as pltpu

NEG_INF = -9000000000000000.0


def _leaky(x, alpha):
    return jnp.where(x >= 0, x, alpha * x)


def _elu(x):
    return jnp.where(x > 0, x, jnp.exp(x) - 1.0)


# ----------------------------------------------------------------------------
# Pallas kernels
# ----------------------------------------------------------------------------
def _gat_stack_kernel(h0_ref, adj_ref, wcat_ref, out_ref, hcur,
                      *, u, v, nh, d, alpha, n_layers):
    """One GAT layer (all heads) per grid step; activation resident in VMEM."""
    l = pl.program_id(1)
    D = nh * d

    @pl.when(l == 0)
    def _():
        hcur[...] = h0_ref[0]                                  # (G, D)

    adjm = adj_ref[0]                                          # (u, v) 1.0 = masked
    Wcat = wcat_ref[l]                                         # (D, D + 2*nh)

    # Single MXU matmul for all heads: [Wh | S], S[:, h]=s1_h, S[:, nh+h]=s2_h.
    proj = jnp.dot(hcur[...], Wcat, preferred_element_type=jnp.float32)  # (G, D+2nh)
    Wh = proj[:, :D]                                           # (G, D) head-blocked
    s1 = proj[:, D:D + nh]                                     # (G, nh)
    s2 = proj[:, D + nh:D + 2 * nh]                            # (G, nh)

    outs = []
    for hd in range(nh):                                       # nh is small & static
        Wh_h = Wh[:, hd * d:(hd + 1) * d]                      # (G, d)
        Wh_u = Wh_h[:u, :]                                     # (u, d)
        Wh_v = Wh_h[u:, :]                                     # (v, d)
        s1h = s1[:, hd:hd + 1]                                 # (G, 1)
        s2h = s2[:, hd:hd + 1]                                 # (G, 1)

        # e[i, j] = leaky(s1_i + s2_{u+j});  e_self[n] = leaky(s1_n + s2_n)
        e = _leaky(s1h[:u, :] + jnp.transpose(s2h[u:, :]), alpha)   # (u, v)
        e_self = _leaky(s1h + s2h, alpha)                           # (G, 1)
        e = jnp.where(adjm > 0.5, NEG_INF, e)

        # attentionU: softmax over [e | e_self[:u]] along the v axis
        m_u = jnp.maximum(jnp.max(e, axis=1, keepdims=True), e_self[:u, :])  # (u,1)
        pe_u = jnp.exp(e - m_u)                                              # (u,v)
        ps_u = jnp.exp(e_self[:u, :] - m_u)                                  # (u,1)
        inv_u = 1.0 / (jnp.sum(pe_u, axis=1, keepdims=True) + ps_u)          # (u,1)
        hu = jnp.dot(pe_u, Wh_v, preferred_element_type=jnp.float32) * inv_u \
            + Wh_u * (ps_u * inv_u)                                          # (u,d)

        # attentionV: softmax over [e ; e_self[u:]^T] along the u axis
        es_v = jnp.transpose(e_self[u:, :])                                  # (1,v)
        m_v = jnp.maximum(jnp.max(e, axis=0, keepdims=True), es_v)           # (1,v)
        pe_v = jnp.exp(e - m_v)                                              # (u,v)
        ps_v = jnp.exp(es_v - m_v)                                           # (1,v)
        inv_v = 1.0 / (jnp.sum(pe_v, axis=0, keepdims=True) + ps_v)          # (1,v)
        # attV^T @ Wh_u via dot_general (contract dim 0), no explicit transpose
        hv = lax.dot_general(pe_v, Wh_u, (((0,), (0,)), ((), ())),
                             preferred_element_type=jnp.float32)             # (v,d)
        hv = hv * jnp.transpose(inv_v) + Wh_v * jnp.transpose(ps_v * inv_v)  # (v,d)

        outs.append(_elu(jnp.concatenate([hu, hv], axis=0)))                 # (G,d)

    new_h = jnp.concatenate(outs, axis=1)                      # (G, D)
    hcur[...] = new_h                                          # single full store

    @pl.when(l == n_layers - 1)
    def _():
        out_ref[0] = new_h                                     # single full store


def _final_kernel(h_ref, adj_ref, w_ref, w12t_ref, wl_ref, out_ref, *, u, v):
    """Masked pairwise-concat + last_layer linear, lane-dense (u, v*D) output."""
    h = h_ref[0]                                               # (G, D)
    D = h.shape[1]
    # One matmul for both linear pieces: P = h_u @ W1^T, Q = h_v @ W2^T.
    PW = jnp.dot(h, w12t_ref[...], preferred_element_type=jnp.float32)  # (G, 2D)
    P = PW[:u, :D]                                             # (u, D)
    Q = PW[u:, D:]                                             # (v, D)
    mask = 1.0 - adj_ref[0]                                    # (u, v)
    wts = w_ref[0]                                             # (u, v)
    wl = wl_ref[...]                                           # (1, D)

    cols = []
    for j in range(v):                                         # v small & static
        cols.append(mask[:, j:j + 1] * (P + Q[j:j + 1, :]) + wts[:, j:j + 1] * wl)
    out_ref[0] = jnp.concatenate(cols, axis=1)                 # (u, v*D) = 128 lanes


# ----------------------------------------------------------------------------
# Wrappers
# ----------------------------------------------------------------------------
def gat_stack(h0, adj_f, wcat, *, u, v, nh, d, alpha, n_layers):
    """h0: (B, G, D) head-blocked columns -> (B, G, D) head-blocked columns."""
    B, G, D = h0.shape
    kernel = functools.partial(_gat_stack_kernel, u=u, v=v, nh=nh, d=d,
                               alpha=alpha, n_layers=n_layers)
    return pl.pallas_call(
        kernel,
        out_shape=jax.ShapeDtypeStruct((B, G, D), jnp.float32),
        grid=(B, n_layers),
        in_specs=[
            pl.BlockSpec((1, G, D), lambda b, l: (b, 0, 0)),
            pl.BlockSpec((1, u, v), lambda b, l: (b, 0, 0)),
            # whole layer-weight stack resident in VMEM, DMA'd once
            pl.BlockSpec((n_layers, D, D + 2 * nh), lambda b, l: (0, 0, 0)),
        ],
        out_specs=pl.BlockSpec((1, G, D), lambda b, l: (b, 0, 0)),
        scratch_shapes=[pltpu.VMEM((G, D), jnp.float32)],
        compiler_params=pltpu.CompilerParams(
            dimension_semantics=("parallel", "arbitrary")),
    )(h0, adj_f, wcat)


def encoder_final(h, adj_f, weights, w12t, wlast, u):
    """h: (B, G, D) -> (B, u*v, D)."""
    B, G, D = h.shape
    v = G - u
    kernel = functools.partial(_final_kernel, u=u, v=v)
    out = pl.pallas_call(
        kernel,
        out_shape=jax.ShapeDtypeStruct((B, u, v * D), jnp.float32),
        grid=(B,),
        in_specs=[
            pl.BlockSpec((1, G, D), lambda b: (b, 0, 0)),
            pl.BlockSpec((1, u, v), lambda b: (b, 0, 0)),
            pl.BlockSpec((1, u, v), lambda b: (b, 0, 0)),
            pl.BlockSpec((D, 2 * D), lambda b: (0, 0)),
            pl.BlockSpec((1, D), lambda b: (0, 0)),
        ],
        out_specs=pl.BlockSpec((1, u, v * D), lambda b: (b, 0, 0)),
        compiler_params=pltpu.CompilerParams(dimension_semantics=("parallel",)),
    )(h, adj_f, weights, w12t, wlast)
    return out.reshape(B, u, v, D).reshape(B, u * v, D)


def graph_attention_encoder(x, adj_bool, weights, params):
    B, G, D = x.shape
    nh = params["n_heads"]
    u = params["u"]
    d = D // nh
    v = G - u
    alpha = params["alpha"]
    n_layers = len(params["layers"])
    adj_f = adj_bool.astype(jnp.float32)

    # Layout plumbing: module's h.view(B, nh, G, d) -> head-blocked columns (B, G, D).
    h0 = x.reshape(B, nh, G, d).transpose(0, 2, 1, 3).reshape(B, G, D)

    # Pre-pack per-layer weights: [block_diag(W_h^T) | block_diag(W_h^T) @ A_cols].
    wcats = []
    for (wt_stack, a_stack) in params["layers"]:
        Wbd = jnp.zeros((D, D), jnp.float32)
        Acol = jnp.zeros((D, 2 * nh), jnp.float32)
        for i in range(nh):
            Wbd = Wbd.at[i * d:(i + 1) * d, i * d:(i + 1) * d].set(wt_stack[i])
            Acol = Acol.at[i * d:(i + 1) * d, i].set(a_stack[i][:, 0])
            Acol = Acol.at[i * d:(i + 1) * d, nh + i].set(a_stack[i][:, 1])
        WA = jnp.dot(Wbd, Acol, precision=lax.Precision.HIGHEST)
        wcats.append(jnp.concatenate([Wbd, WA], axis=1))
    wcat = jnp.stack(wcats, axis=0)                       # (L, D, D + 2*nh)

    h = gat_stack(h0, adj_f, wcat, u=u, v=v, nh=nh, d=d, alpha=alpha,
                  n_layers=n_layers)

    # Back to the module's (B, G, D) layout (== h.view from (B, nh, G, d)).
    h_mod = h.reshape(B, G, nh, d).transpose(0, 2, 1, 3).reshape(B, G, D)

    Wl = params["last_layer"]                             # (D, 2D+1)
    w12t = jnp.concatenate(
        [jnp.transpose(Wl[:, :D]), jnp.transpose(Wl[:, D:2 * D])], axis=1)  # (D, 2D)
    wlast = Wl[:, 2 * D].reshape(1, D)                    # (1, D)
    return encoder_final(h_mod, adj_f, weights.astype(jnp.float32), w12t, wlast, u)


# ----------------------------------------------------------------------------
# Pure-JAX reference (mirrors the PyTorch module, eval mode / dropout=0)
# ----------------------------------------------------------------------------
HI = lax.Precision.HIGHEST


def _ref_gat_head(h, adj_bool, Wt, A, u, alpha):
    Wh = jnp.einsum("bgd,de->bge", h, Wt, precision=HI)
    S = jnp.einsum("bgd,dk->bgk", Wh, A, precision=HI)
    s1, s2 = S[..., 0], S[..., 1]
    e = _leaky(s1[:, :u, None] + s2[:, None, u:], alpha)
    e_self = _leaky(s1 + s2, alpha)
    e = jnp.where(adj_bool, NEG_INF, e)
    attU = jax.nn.softmax(jnp.concatenate([e, e_self[:, :u, None]], axis=2), axis=2)
    attV = jnp.swapaxes(
        jax.nn.softmax(jnp.concatenate([e, e_self[:, None, u:]], axis=1), axis=1), 1, 2)
    hu = jnp.einsum("buv,bvd->bud", attU[:, :, :-1], Wh[:, u:, :], precision=HI) \
        + Wh[:, :u, :] * attU[:, :, -1:]
    hv = jnp.einsum("bvu,bud->bvd", attV[:, :, :-1], Wh[:, :u, :], precision=HI) \
        + attV[:, :, -1:] * Wh[:, u:, :]
    hp = jnp.concatenate([hu, hv], axis=1)
    return jnp.where(hp > 0, hp, jnp.exp(hp) - 1.0)


def ref_encoder(x, adj_bool, weights, params):
    B, G, D = x.shape
    nh, u, alpha = params["n_heads"], params["u"], params["alpha"]
    d = D // nh
    v = G - u
    h = x.reshape(B, nh, G, d)
    for (wt_stack, a_stack) in params["layers"]:
        h = jnp.stack(
            [_ref_gat_head(h[:, i], adj_bool, wt_stack[i], a_stack[i], u, alpha)
             for i in range(nh)], axis=1)
    h = h.reshape(B, G, D)
    rep_u = jnp.repeat(h[:, :u, :], v, axis=1)
    rep_v = jnp.tile(h[:, u:, :], (1, u, 1))
    comb = jnp.concatenate([rep_u, rep_v], axis=2).reshape(B, u, v, 2 * D)
    comb = comb * (1.0 - adj_bool.astype(jnp.float32))[..., None]
    inp = jnp.concatenate([comb, weights.astype(jnp.float32)[..., None]], axis=3)
    out = jnp.einsum("buvk,dk->buvd", inp, params["last_layer"], precision=HI)
    return out.reshape(B, u * v, D)


# ----------------------------------------------------------------------------
# Deterministic parameter init (xavier_uniform, gain=1.414, like the module)
# ----------------------------------------------------------------------------
def _xavier(key, shape, gain=1.414):
    fan_out, fan_in = shape[-2], shape[-1]
    bound = gain * math.sqrt(6.0 / (fan_in + fan_out))
    return jax.random.uniform(key, shape, jnp.float32, -bound, bound)


def make_params(key, n_layers, n_heads, embed_dim, alpha, u):
    d = embed_dim // n_heads
    layers = []
    for _ in range(n_layers):
        wt_list, a_list = [], []
        for _ in range(n_heads):
            key, kw, ka = jax.random.split(key, 3)
            W = _xavier(kw, (d, d))                     # nn.Linear(d, d).weight
            a_w = _xavier(ka, (1, 2 * d))               # nn.Linear(2d, 1).weight
            wt_list.append(jnp.transpose(W))            # (in, out)
            a_list.append(jnp.stack([a_w[0, :d], a_w[0, d:]], axis=1))   # (d, 2)
        layers.append((jnp.stack(wt_list, 0), jnp.stack(a_list, 0)))
    key, kl = jax.random.split(key)
    bound = 1.0 / math.sqrt(2 * embed_dim + 1)
    Wl = jax.random.uniform(kl, (embed_dim, 2 * embed_dim + 1), jnp.float32, -bound, bound)
    return {"layers": layers, "last_layer": Wl, "n_heads": n_heads,
            "u": u, "alpha": alpha}


# ----------------------------------------------------------------------------
if __name__ == "__main__":
    B, G, D = 2, 8, 32
    n_heads, n_layers = 2, 2
    u_size = 3
    u = u_size + 1
    v = G - u
    alpha = 0.01

    key = jax.random.PRNGKey(0)
    key, kx, ka, kw, kp = jax.random.split(key, 5)
    x = jax.random.normal(kx, (B, G, D), jnp.float32)
    adj = jax.random.bernoulli(ka, 0.3, (B, u, v))                 # bool mask
    weights = jax.random.uniform(kw, (B, u, v), jnp.float32)

    params = make_params(kp, n_layers, n_heads, D, alpha, u)

    out = graph_attention_encoder(x, adj, weights, params)
    out = jax.block_until_ready(out)

    ref = ref_encoder(x, adj, weights, params)
    assert out.shape == (B, u * v, D), out.shape
    max_err = float(jnp.max(jnp.abs(out - ref)))
    assert max_err < 1e-2, f"mismatch vs reference: {max_err}"

    print("KERNEL_OK")
</pallas_src>

<mosaic_0001>
module attributes {stable_mosaic.version = 11 : i64} {
  func.func @_gat_stack_kernel(%arg0: i32, %arg1: i32, %arg2: memref<1x8x32xf32, #tpu.memory_space<vmem>>, %arg3: memref<1x4x4xf32, #tpu.memory_space<vmem>>, %arg4: memref<2x32x36xf32, #tpu.memory_space<vmem>>, %arg5: memref<1x8x32xf32, #tpu.memory_space<vmem>>, %arg6: memref<8x32xf32, #tpu.memory_space<vmem>>) attributes {dimension_semantics = [#tpu.dimension_semantics<parallel>, #tpu.dimension_semantics<arbitrary>], iteration_bounds = array<i64: 2, 2>, scalar_prefetch = 0 : i64, scratch_operands = 1 : i64, tpu.core_type = #tpu.core_type<tc>, window_params = [{transform_indices = @transform_0, window_bounds = array<i64: 1, 8, 32>}, {transform_indices = @transform_1, window_bounds = array<i64: 1, 4, 4>}, {pipeline_mode = #tpu.pipeline_mode<synchronous>, transform_indices = @transform_2, window_bounds = array<i64: 2, 32, 36>}, {transform_indices = @transform_3, window_bounds = array<i64: 1, 8, 32>}]} {
    %c0_i32 = arith.constant 0 : i32
    %0 = arith.cmpi eq, %arg1, %c0_i32 : i32
    %1 = arith.extui %0 : i1 to i32
    %c0_i32_0 = arith.constant 0 : i32
    %2 = arith.cmpi ne, %1, %c0_i32_0 : i32
    scf.if %2 {
      %c0_42 = arith.constant 0 : index
      %c0_43 = arith.constant 0 : index
      %c0_44 = arith.constant 0 : index
      %176 = vector.load %arg2[%c0_42, %c0_43, %c0_44] : memref<1x8x32xf32, #tpu.memory_space<vmem>>, vector<1x8x32xf32>
      %177 = vector.shape_cast %176 : vector<1x8x32xf32> to vector<8x32xf32>
      %c0_45 = arith.constant 0 : index
      %c0_46 = arith.constant 0 : index
      %178 = vector.load %arg6[%c0_45, %c0_46] : memref<8x32xf32, #tpu.memory_space<vmem>>, vector<8x32xf32>
      tpu.vector_store %arg6[%c0_45, %c0_46], %177 {strides = array<i32>} : memref<8x32xf32, #tpu.memory_space<vmem>>, vector<8x32xf32>,
    } else {
    }
    %c0 = arith.constant 0 : index
    %c0_1 = arith.constant 0 : index
    %c0_2 = arith.constant 0 : index
    %3 = vector.load %arg3[%c0, %c0_1, %c0_2] : memref<1x4x4xf32, #tpu.memory_space<vmem>>, vector<1x4x4xf32>
    %4 = vector.shape_cast %3 : vector<1x4x4xf32> to vector<4x4xf32>
    %5 = arith.index_cast %arg1 : i32 to index
    %c0_3 = arith.constant 0 : index
    %c0_4 = arith.constant 0 : index
    %6 = vector.load %arg4[%5, %c0_3, %c0_4] : memref<2x32x36xf32, #tpu.memory_space<vmem>>, vector<1x32x36xf32>
    %7 = vector.shape_cast %6 : vector<1x32x36xf32> to vector<32x36xf32>
    %c0_5 = arith.constant 0 : index
    %c0_6 = arith.constant 0 : index
    %8 = vector.load %arg6[%c0_5, %c0_6] : memref<8x32xf32, #tpu.memory_space<vmem>>, vector<8x32xf32>
    %cst = arith.constant dense<0.000000e+00> : vector<8x36xf32>
    %9 = tpu.matmul %8, %7, %cst {dimension_numbers = #tpu.dot_dimension_numbers<[1], [0], [0], [1], [0, 0, 1, 1], [], []>} : vector<8x32xf32>, vector<32x36xf32>, vector<8x36xf32> -> vector<8x36xf32>
    %10 = vector.extract_strided_slice %9 {offsets = [0, 0], sizes = [8, 32], strides = [1, 1]} : vector<8x36xf32> to vector<8x32xf32>
    %11 = vector.extract_strided_slice %9 {offsets = [0, 32], sizes = [8, 2], strides = [1, 1]} : vector<8x36xf32> to vector<8x2xf32>
    %12 = vector.extract_strided_slice %9 {offsets = [0, 34], sizes = [8, 2], strides = [1, 1]} : vector<8x36xf32> to vector<8x2xf32>
    %13 = vector.extract_strided_slice %10 {offsets = [0, 0], sizes = [8, 16], strides = [1, 1]} : vector<8x32xf32> to vector<8x16xf32>
    %14 = vector.extract_strided_slice %13 {offsets = [0, 0], sizes = [4, 16], strides = [1, 1]} : vector<8x16xf32> to vector<4x16xf32>
    %15 = vector.extract_strided_slice %13 {offsets = [4, 0], sizes = [4, 16], strides = [1, 1]} : vector<8x16xf32> to vector<4x16xf32>
    %16 = vector.extract_strided_slice %11 {offsets = [0, 0], sizes = [8, 1], strides = [1, 1]} : vector<8x2xf32> to vector<8x1xf32>
    %17 = vector.extract_strided_slice %12 {offsets = [0, 0], sizes = [8, 1], strides = [1, 1]} : vector<8x2xf32> to vector<8x1xf32>
    %18 = vector.extract_strided_slice %16 {offsets = [0, 0], sizes = [4, 1], strides = [1, 1]} : vector<8x1xf32> to vector<4x1xf32>
    %19 = vector.extract_strided_slice %17 {offsets = [4, 0], sizes = [4, 1], strides = [1, 1]} : vector<8x1xf32> to vector<4x1xf32>
    %20 = tpu.transpose %19, [1, 0] : vector<4x1xf32> -> vector<1x4xf32>
    %21 = vector.broadcast %18 : vector<4x1xf32> to vector<4x4xf32>
    %22 = vector.broadcast %20 : vector<1x4xf32> to vector<4x4xf32>
    %23 = arith.addf %21, %22 : vector<4x4xf32>
    %cst_7 = arith.constant 0.000000e+00 : f32
    %24 = vector.broadcast %cst_7 : f32 to vector<4x4xf32>
    %25 = arith.cmpf oge, %23, %24 : vector<4x4xf32>
    %cst_8 = arith.constant 0.00999999977 : f32
    %26 = vector.broadcast %cst_8 : f32 to vector<4x4xf32>
    %27 = arith.mulf %26, %23 : vector<4x4xf32>
    %28 = arith.select %25, %23, %27 : vector<4x4xi1>, vector<4x4xf32>
    %29 = arith.addf %16, %17 : vector<8x1xf32>
    %cst_9 = arith.constant 0.000000e+00 : f32
    %30 = vector.broadcast %cst_9 : f32 to vector<8x1xf32>
    %31 = arith.cmpf oge, %29, %30 : vector<8x1xf32>
    %cst_10 = arith.constant 0.00999999977 : f32
    %32 = vector.broadcast %cst_10 : f32 to vector<8x1xf32>
    %33 = arith.mulf %32, %29 : vector<8x1xf32>
    %34 = arith.select %31, %29, %33 : vector<8x1xi1>, vector<8x1xf32>
    %cst_11 = arith.constant 5.000000e-01 : f32
    %35 = vector.broadcast %cst_11 : f32 to vector<4x4xf32>
    %36 = arith.cmpf ogt, %4, %35 : vector<4x4xf32>
    %cst_12 = arith.constant -9.000000e+15 : f32
    %37 = vector.broadcast %cst_12 : f32 to vector<4x4xf32>
    %38 = arith.select %36, %37, %28 : vector<4x4xi1>, vector<4x4xf32>
    %cst_13 = arith.constant dense<0xFF800000> : vector<4xf32>
    %39 = vector.multi_reduction <maximumf>, %38, %cst_13 [1] : vector<4x4xf32> to vector<4xf32>
    %40 = vector.shape_cast %39 : vector<4xf32> to vector<4x1xf32>
    %41 = vector.extract_strided_slice %34 {offsets = [0, 0], sizes = [4, 1], strides = [1, 1]} : vector<8x1xf32> to vector<4x1xf32>
    %42 = arith.maximumf %40, %41 : vector<4x1xf32>
    %43 = vector.broadcast %42 : vector<4x1xf32> to vector<4x4xf32>
    %44 = arith.subf %38, %43 : vector<4x4xf32>
    %45 = math.exp %44 : vector<4x4xf32>
    %46 = vector.extract_strided_slice %34 {offsets = [0, 0], sizes = [4, 1], strides = [1, 1]} : vector<8x1xf32> to vector<4x1xf32>
    %47 = arith.subf %46, %42 : vector<4x1xf32>
    %48 = math.exp %47 : vector<4x1xf32>
    %cst_14 = arith.constant dense<0.000000e+00> : vector<4xf32>
    %49 = vector.multi_reduction <add>, %45, %cst_14 [1] : vector<4x4xf32> to vector<4xf32>
    %50 = vector.shape_cast %49 : vector<4xf32> to vector<4x1xf32>
    %51 = arith.addf %50, %48 : vector<4x1xf32>
    %cst_15 = arith.constant 1.000000e+00 : f32
    %52 = vector.broadcast %cst_15 : f32 to vector<4x1xf32>
    %53 = arith.divf %52, %51 : vector<4x1xf32>
    %cst_16 = arith.constant dense<0.000000e+00> : vector<4x16xf32>
    %54 = tpu.matmul %45, %15, %cst_16 {dimension_numbers = #tpu.dot_dimension_numbers<[1], [0], [0], [1], [0, 0, 1, 1], [], []>} : vector<4x4xf32>, vector<4x16xf32>, vector<4x16xf32> -> vector<4x16xf32>
    %55 = vector.broadcast %53 : vector<4x1xf32> to vector<4x16xf32>
    %56 = arith.mulf %54, %55 : vector<4x16xf32>
    %57 = arith.mulf %48, %53 : vector<4x1xf32>
    %58 = vector.broadcast %57 : vector<4x1xf32> to vector<4x16xf32>
    %59 = arith.mulf %14, %58 : vector<4x16xf32>
    %60 = arith.addf %56, %59 : vector<4x16xf32>
    %61 = vector.extract_strided_slice %34 {offsets = [4, 0], sizes = [4, 1], strides = [1, 1]} : vector<8x1xf32> to vector<4x1xf32>
    %62 = tpu.transpose %61, [1, 0] : vector<4x1xf32> -> vector<1x4xf32>
    %cst_17 = arith.constant dense<0xFF800000> : vector<4xf32>
    %63 = vector.multi_reduction <maximumf>, %38, %cst_17 [0] : vector<4x4xf32> to vector<4xf32>
    %64 = vector.shape_cast %63 : vector<4xf32> to vector<1x4xf32>
    %65 = arith.maximumf %64, %62 : vector<1x4xf32>
    %66 = vector.broadcast %65 : vector<1x4xf32> to vector<4x4xf32>
    %67 = arith.subf %38, %66 : vector<4x4xf32>
    %68 = math.exp %67 : vector<4x4xf32>
    %69 = arith.subf %62, %65 : vector<1x4xf32>
    %70 = math.exp %69 : vector<1x4xf32>
    %cst_18 = arith.constant dense<0.000000e+00> : vector<4xf32>
    %71 = vector.multi_reduction <add>, %68, %cst_18 [0] : vector<4x4xf32> to vector<4xf32>
    %72 = vector.shape_cast %71 : vector<4xf32> to vector<1x4xf32>
    %73 = arith.addf %72, %70 : vector<1x4xf32>
    %cst_19 = arith.constant 1.000000e+00 : f32
    %74 = vector.broadcast %cst_19 : f32 to vector<1x4xf32>
    %75 = arith.divf %74, %73 : vector<1x4xf32>
    %cst_20 = arith.constant dense<0.000000e+00> : vector<4x16xf32>
    %76 = tpu.matmul %68, %14, %cst_20 {dimension_numbers = #tpu.dot_dimension_numbers<[0], [0], [1], [1], [0, 1, 1, 1], [], []>} : vector<4x4xf32>, vector<4x16xf32>, vector<4x16xf32> -> vector<4x16xf32>
    %77 = tpu.transpose %75, [1, 0] : vector<1x4xf32> -> vector<4x1xf32>
    %78 = vector.broadcast %77 : vector<4x1xf32> to vector<4x16xf32>
    %79 = arith.mulf %76, %78 : vector<4x16xf32>
    %80 = arith.mulf %70, %75 : vector<1x4xf32>
    %81 = tpu.transpose %80, [1, 0] : vector<1x4xf32> -> vector<4x1xf32>
    %82 = vector.broadcast %81 : vector<4x1xf32> to vector<4x16xf32>
    %83 = arith.mulf %15, %82 : vector<4x16xf32>
    %84 = arith.addf %79, %83 : vector<4x16xf32>
    %85 = tpu.concatenate %60, %84 in 0 : vector<4x16xf32>, vector<4x16xf32> -> vector<8x16xf32>
    %cst_21 = arith.constant 0.000000e+00 : f32
    %86 = vector.broadcast %cst_21 : f32 to vector<8x16xf32>
    %87 = arith.cmpf ogt, %85, %86 : vector<8x16xf32>
    %88 = math.exp %85 : vector<8x16xf32>
    %cst_22 = arith.constant 1.000000e+00 : f32
    %89 = vector.broadcast %cst_22 : f32 to vector<8x16xf32>
    %90 = arith.subf %88, %89 : vector<8x16xf32>
    %91 = arith.select %87, %85, %90 : vector<8x16xi1>, vector<8x16xf32>
    %92 = vector.extract_strided_slice %10 {offsets = [0, 16], sizes = [8, 16], strides = [1, 1]} : vector<8x32xf32> to vector<8x16xf32>
    %93 = vector.extract_strided_slice %92 {offsets = [0, 0], sizes = [4, 16], strides = [1, 1]} : vector<8x16xf32> to vector<4x16xf32>
    %94 = vector.extract_strided_slice %92 {offsets = [4, 0], sizes = [4, 16], strides = [1, 1]} : vector<8x16xf32> to vector<4x16xf32>
    %95 = vector.extract_strided_slice %11 {offsets = [0, 1], sizes = [8, 1], strides = [1, 1]} : vector<8x2xf32> to vector<8x1xf32>
    %96 = vector.extract_strided_slice %12 {offsets = [0, 1], sizes = [8, 1], strides = [1, 1]} : vector<8x2xf32> to vector<8x1xf32>
    %97 = vector.extract_strided_slice %95 {offsets = [0, 0], sizes = [4, 1], strides = [1, 1]} : vector<8x1xf32> to vector<4x1xf32>
    %98 = vector.extract_strided_slice %96 {offsets = [4, 0], sizes = [4, 1], strides = [1, 1]} : vector<8x1xf32> to vector<4x1xf32>
    %99 = tpu.transpose %98, [1, 0] : vector<4x1xf32> -> vector<1x4xf32>
    %100 = vector.broadcast %97 : vector<4x1xf32> to vector<4x4xf32>
    %101 = vector.broadcast %99 : vector<1x4xf32> to vector<4x4xf32>
    %102 = arith.addf %100, %101 : vector<4x4xf32>
    %cst_23 = arith.constant 0.000000e+00 : f32
    %103 = vector.broadcast %cst_23 : f32 to vector<4x4xf32>
    %104 = arith.cmpf oge, %102, %103 : vector<4x4xf32>
    %cst_24 = arith.constant 0.00999999977 : f32
    %105 = vector.broadcast %cst_24 : f32 to vector<4x4xf32>
    %106 = arith.mulf %105, %102 : vector<4x4xf32>
    %107 = arith.select %104, %102, %106 : vector<4x4xi1>, vector<4x4xf32>
    %108 = arith.addf %95, %96 : vector<8x1xf32>
    %cst_25 = arith.constant 0.000000e+00 : f32
    %109 = vector.broadcast %cst_25 : f32 to vector<8x1xf32>
    %110 = arith.cmpf oge, %108, %109 : vector<8x1xf32>
    %cst_26 = arith.constant 0.00999999977 : f32
    %111 = vector.broadcast %cst_26 : f32 to vector<8x1xf32>
    %112 = arith.mulf %111, %108 : vector<8x1xf32>
    %113 = arith.select %110, %108, %112 : vector<8x1xi1>, vector<8x1xf32>
    %cst_27 = arith.constant 5.000000e-01 : f32
    %114 = vector.broadcast %cst_27 : f32 to vector<4x4xf32>
    %115 = arith.cmpf ogt, %4, %114 : vector<4x4xf32>
    %cst_28 = arith.constant -9.000000e+15 : f32
    %116 = vector.broadcast %cst_28 : f32 to vector<4x4xf32>
    %117 = arith.select %115, %116, %107 : vector<4x4xi1>, vector<4x4xf32>
    %cst_29 = arith.constant dense<0xFF800000> : vector<4xf32>
    %118 = vector.multi_reduction <maximumf>, %117, %cst_29 [1] : vector<4x4xf32> to vector<4xf32>
    %119 = vector.shape_cast %118 : vector<4xf32> to vector<4x1xf32>
    %120 = vector.extract_strided_slice %113 {offsets = [0, 0], sizes = [4, 1], strides = [1, 1]} : vector<8x1xf32> to vector<4x1xf32>
    %121 = arith.maximumf %119, %120 : vector<4x1xf32>
    %122 = vector.broadcast %121 : vector<4x1xf32> to vector<4x4xf32>
    %123 = arith.subf %117, %122 : vector<4x4xf32>
    %124 = math.exp %123 : vector<4x4xf32>
    %125 = vector.extract_strided_slice %113 {offsets = [0, 0], sizes = [4, 1], strides = [1, 1]} : vector<8x1xf32> to vector<4x1xf32>
    %126 = arith.subf %125, %121 : vector<4x1xf32>
    %127 = math.exp %126 : vector<4x1xf32>
    %cst_30 = arith.constant dense<0.000000e+00> : vector<4xf32>
    %128 = vector.multi_reduction <add>, %124, %cst_30 [1] : vector<4x4xf32> to vector<4xf32>
    %129 = vector.shape_cast %128 : vector<4xf32> to vector<4x1xf32>
    %130 = arith.addf %129, %127 : vector<4x1xf32>
    %cst_31 = arith.constant 1.000000e+00 : f32
    %131 = vector.broadcast %cst_31 : f32 to vector<4x1xf32>
    %132 = arith.divf %131, %130 : vector<4x1xf32>
    %cst_32 = arith.constant dense<0.000000e+00> : vector<4x16xf32>
    %133 = tpu.matmul %124, %94, %cst_32 {dimension_numbers = #tpu.dot_dimension_numbers<[1], [0], [0], [1], [0, 0, 1, 1], [], []>} : vector<4x4xf32>, vector<4x16xf32>, vector<4x16xf32> -> vector<4x16xf32>
    %134 = vector.broadcast %132 : vector<4x1xf32> to vector<4x16xf32>
    %135 = arith.mulf %133, %134 : vector<4x16xf32>
    %136 = arith.mulf %127, %132 : vector<4x1xf32>
    %137 = vector.broadcast %136 : vector<4x1xf32> to vector<4x16xf32>
    %138 = arith.mulf %93, %137 : vector<4x16xf32>
    %139 = arith.addf %135, %138 : vector<4x16xf32>
    %140 = vector.extract_strided_slice %113 {offsets = [4, 0], sizes = [4, 1], strides = [1, 1]} : vector<8x1xf32> to vector<4x1xf32>
    %141 = tpu.transpose %140, [1, 0] : vector<4x1xf32> -> vector<1x4xf32>
    %cst_33 = arith.constant dense<0xFF800000> : vector<4xf32>
    %142 = vector.multi_reduction <maximumf>, %117, %cst_33 [0] : vector<4x4xf32> to vector<4xf32>
    %143 = vector.shape_cast %142 : vector<4xf32> to vector<1x4xf32>
    %144 = arith.maximumf %143, %141 : vector<1x4xf32>
    %145 = vector.broadcast %144 : vector<1x4xf32> to vector<4x4xf32>
    %146 = arith.subf %117, %145 : vector<4x4xf32>
    %147 = math.exp %146 : vector<4x4xf32>
    %148 = arith.subf %141, %144 : vector<1x4xf32>
    %149 = math.exp %148 : vector<1x4xf32>
    %cst_34 = arith.constant dense<0.000000e+00> : vector<4xf32>
    %150 = vector.multi_reduction <add>, %147, %cst_34 [0] : vector<4x4xf32> to vector<4xf32>
    %151 = vector.shape_cast %150 : vector<4xf32> to vector<1x4xf32>
    %152 = arith.addf %151, %149 : vector<1x4xf32>
    %cst_35 = arith.constant 1.000000e+00 : f32
    %153 = vector.broadcast %cst_35 : f32 to vector<1x4xf32>
    %154 = arith.divf %153, %152 : vector<1x4xf32>
    %cst_36 = arith.constant dense<0.000000e+00> : vector<4x16xf32>
    %155 = tpu.matmul %147, %93, %cst_36 {dimension_numbers = #tpu.dot_dimension_numbers<[0], [0], [1], [1], [0, 1, 1, 1], [], []>} : vector<4x4xf32>, vector<4x16xf32>, vector<4x16xf32> -> vector<4x16xf32>
    %156 = tpu.transpose %154, [1, 0] : vector<1x4xf32> -> vector<4x1xf32>
    %157 = vector.broadcast %156 : vector<4x1xf32> to vector<4x16xf32>
    %158 = arith.mulf %155, %157 : vector<4x16xf32>
    %159 = arith.mulf %149, %154 : vector<1x4xf32>
    %160 = tpu.transpose %159, [1, 0] : vector<1x4xf32> -> vector<4x1xf32>
    %161 = vector.broadcast %160 : vector<4x1xf32> to vector<4x16xf32>
    %162 = arith.mulf %94, %161 : vector<4x16xf32>
    %163 = arith.addf %158, %162 : vector<4x16xf32>
    %164 = tpu.concatenate %139, %163 in 0 : vector<4x16xf32>, vector<4x16xf32> -> vector<8x16xf32>
    %cst_37 = arith.constant 0.000000e+00 : f32
    %165 = vector.broadcast %cst_37 : f32 to vector<8x16xf32>
    %166 = arith.cmpf ogt, %164, %165 : vector<8x16xf32>
    %167 = math.exp %164 : vector<8x16xf32>
    %cst_38 = arith.constant 1.000000e+00 : f32
    %168 = vector.broadcast %cst_38 : f32 to vector<8x16xf32>
    %169 = arith.subf %167, %168 : vector<8x16xf32>
    %170 = arith.select %166, %164, %169 : vector<8x16xi1>, vector<8x16xf32>
    %171 = tpu.concatenate %91, %170 in 1 : vector<8x16xf32>, vector<8x16xf32> -> vector<8x32xf32>
    %c0_39 = arith.constant 0 : index
    %c0_40 = arith.constant 0 : index
    %172 = vector.load %arg6[%c0_39, %c0_40] : memref<8x32xf32, #tpu.memory_space<vmem>>, vector<8x32xf32>
    tpu.vector_store %arg6[%c0_39, %c0_40], %171 {strides = array<i32>} : memref<8x32xf32, #tpu.memory_space<vmem>>, vector<8x32xf32>,
    %c1_i32 = arith.constant 1 : i32
    %173 = arith.cmpi eq, %arg1, %c1_i32 : i32
    %174 = arith.extui %173 : i1 to i32
    %c0_i32_41 = arith.constant 0 : i32
    %175 = arith.cmpi ne, %174, %c0_i32_41 : i32
    scf.if %175 {
      %c0_42 = arith.constant 0 : index
      %c0_43 = arith.constant 0 : index
      %c0_44 = arith.constant 0 : index
      %176 = vector.load %arg5[%c0_42, %c0_43, %c0_44] : memref<1x8x32xf32, #tpu.memory_space<vmem>>, vector<1x8x32xf32>
      %177 = vector.shape_cast %176 : vector<1x8x32xf32> to vector<8x32xf32>
      %178 = vector.shape_cast %171 : vector<8x32xf32> to vector<1x8x32xf32>
      tpu.vector_store %arg5[%c0_42, %c0_43, %c0_44], %178 {strides = array<i32>} : memref<1x8x32xf32, #tpu.memory_space<vmem>>, vector<1x8x32xf32>,
    } else {
    }
    return
  }
  func.func @transform_0(%arg0: i32, %arg1: i32) -> (i32, i32, i32) {
    %c0_i32 = arith.constant 0 : i32
    %c0_i32_0 = arith.constant 0 : i32
    %c0_i32_1 = arith.constant 0 : i32
    return %arg0, %c0_i32, %c0_i32_0 : i32, i32, i32
  }
  func.func @transform_1(%arg0: i32, %arg1: i32) -> (i32, i32, i32) {
    %c0_i32 = arith.constant 0 : i32
    %c0_i32_0 = arith.constant 0 : i32
    %c0_i32_1 = arith.constant 0 : i32
    return %arg0, %c0_i32, %c0_i32_0 : i32, i32, i32
  }
  func.func @transform_2(%arg0: i32, %arg1: i32) -> (i32, i32, i32) {
    %c0_i32 = arith.constant 0 : i32
    %c0_i32_0 = arith.constant 0 : i32
    %c0_i32_1 = arith.constant 0 : i32
    %c0_i32_2 = arith.constant 0 : i32
    return %c0_i32, %c0_i32_0, %c0_i32_1 : i32, i32, i32
  }
  func.func @transform_3(%arg0: i32, %arg1: i32) -> (i32, i32, i32) {
    %c0_i32 = arith.constant 0 : i32
    %c0_i32_0 = arith.constant 0 : i32
    %c0_i32_1 = arith.constant 0 : i32
    return %arg0, %c0_i32, %c0_i32_0 : i32, i32, i32
  }
}

</mosaic_0001>

<bundles_post_ra>
// kernel: tpu_custom_call.1
= control target key start
LH: loop header
LB: loop body
LE: loop exit
PB: predicated region body
PF: predicated region fallthrough
CT: control target
= control target key end

     0   :  { %s2086_s0 = inlined_call_operand.hbm [shape: f32[2,8,32], index: 0, kind: input, shape index: {}]   ;;  %s2087_s1 = inlined_call_operand.hbm [shape: f32[2,4,4], index: 1, kind: input, shape index: {}]   ;;  %s2088_s2 = inlined_call_operand.hbm [shape: f32[2,32,36], index: 2, kind: input, shape index: {}]   ;;  %s2089_s3 = inlined_call_operand.hbm [shape: f32[2,8,32], index: 3, kind: output, shape index: {}]  }
   0x1   :  { %2092 = sst [smem:[#allocation18_spill]] %s2086_s0 }
   0x2   :  { %2093 = sst [smem:[#allocation19_spill]] %s2088_s2 }
   0x3   :  { %8 = vsyncpa [#allocation4], 0 }
   0x4   :  { %10 = vsyncpa [#allocation4 + $0x1], 0 }
   0x5   :  { %11 = vsyncpa [#allocation7], 0 }
   0x6   :  { %13 = vsyncpa [#allocation7 + $0x1], 0 }
   0x7   :  { %14 = vsyncpa [#allocation5], 0 }
   0x8   :  { %16 = vsyncpa [#allocation5 + $0x1], 0  ;;  %s1790_s12 = smov 0   ;;  %s1792_s13 = smov 0  }
   0x9   :  { %s1794_s14 = smov 0   ;;  %s1796_s15 = smov 0  }
   0xa   :  { %s1798_s16 = smov 0   ;;  %s1800_s17 = smov 0  }
   0xb   :  { %s1802_s18 = smov 0   ;;  %s1804_s19 = smov 0  }
   0xc LB: > { %2094 = sst [smem:[#allocation14_spill]] %s1742_s17  ;;  %s1831_s20 = sadd.s32 4294967295, %s1750_s19   ;;  %s1750_s19 = sphi %s1804_s19, %s22_s19   ;;  %s1746_s18 = sphi %s1802_s18, %s2115_s18   ;;  %s1742_s17 = sphi %s1800_s17, %s2109_s17   ;;  %s1738_s16 = sphi %s1798_s16, %s2114_s16   ;;  %s1734_s15 = sphi %s1796_s15, %s2108_s15   ;;  %s1730_s14 = sphi %s1794_s14, %s2113_s14   ;;  %s1726_s13 = sphi %s1792_s13, %s2112_s13   ;;  %s1722_s12 = sphi %s1790_s12, %s2111_s12  }
   0xd   : > { %s1341_s21 = sadd.s32 4294967294, %s1750_s19   ;;  %p54_p0 = scmp.ne.s32.totalorder %s1726_s13, %s1722_s12 }
   0xe   : > { %p55_p1 = scmp.eq.s32.totalorder %s1831_s20, 0  ;;  %p131_p3 = scmp.eq.s32.totalorder %s1341_s21, 3 }
   0xf   : > { %p1342_p5 = scmp.ge.s32.totalorder %s1750_s19, 1  ;;  %p138_p7 = scmp.lt.s32.totalorder %s1750_s19, 5 }
  0x10   : > { %p1840_p4 = por %p55_p1, %p54_p0  ;;  %p1845_p6 = por %p131_p3, %p54_p0 }
  0x11   : > { %p1850_p8 = pnand %p1342_p5, %p138_p7  ;;  %s1752_s25 = smov [#allocation8]  }
  0x12   : > { %s2096_s23 = scalar_select %p1845_p6, 1, 0 }
  0x13   : > { %s150_s26 = sshll.u32 %s1752_s25, 4  ;;  %p1426_p9 = pneg %p1850_p8  ;;  %s151_s26 = int_to_ptr.vmem [resolvable:$true] %s150_s26 }
  0x14   : > { %s1575_s27 = scalar_lea.vmem %s151_s26, 1024  ;;  %p1583_p3 = scmp.lt.s32.totalorder %s151_s26, %s151_s26 }
  0x15   : > { %p1427_p10 = pnand %p1426_p9, %p55_p1  ;;  %p1576_p12 = scmp.ne.s32.totalorder %s151_s26, %s1575_s27 }
  0x16   : > { %p1584_p2 = scmp.lt.s32.totalorder %s1575_s27, %s1575_s27 }
  0x17   : > { %p1566_p11 = pneg %p1427_p10 }
  0x18   : > { %p1585_p6 = por %p1584_p2, %p1583_p3 }
  0x19   : > { %p1578_p13 = pnand %p1576_p12, %p1566_p11 }
  0x1b   : > { %p1579_p0 = pneg %p1578_p13 }
  0x1d   : > { %p1586_p5 = pnand %p1585_p6, %p1579_p0 }
  0x1f   : > { %1589 = shalt.err (!%p1586_p5)
}
  0x20   : > { %s1753_s28 = smov 128   ;;  %s1754_s29 = smov 8  }
  0x21   : > { %s2098_s2 = sld [smem:[#allocation19_spill]]  ;;  %s31_s5 = sadd.s32 1, %s1742_s17 }
  0x22   : > { %p32_p2 = scmp.ge.s32.totalorder %s31_s5, 2  ;;  %s34_s6 = sadd.s32 1, %s1746_s18 }
  0x23   : > { %s41_s7 = sadd.s32 1, %s1730_s14  ;;  %p48_p6 = scmp.ne.s32.totalorder %s1730_s14, %s1726_s13 }
  0x24   : > { %s2117_s5 = smov (%p32_p2, %s31_s5), 0  ;;  %s2119_s6 = smov (!%p32_p2, %s34_s6), %s1746_s18 }
  0x25   : > { %2099 = sst [smem:[#allocation15_spill]] %s2117_s5  ;;  %p49_p7 = scmp.eq.s32.totalorder %s1750_s19, 0 }
  0x26   : > { %p2100_p9 = scmp.eq.s32.totalorder %s1831_s20, 3  ;;  %p1442_p12 = scmp.lt.s32.totalorder %s1750_s19, 4 }
  0x27   : > { %1429 = dma.hbm_to_vmem [thread:$0]  (!%p1427_p10), %s2098_s2, 1024, %s151_s26, [#allocation7], %s1753_s28, %s1753_s28, %s1754_s29  }
  0x28   : > { %p1872_p11 = por %p2100_p9, %p48_p6  ;;  %p36_p10 = scmp.ge.s32.totalorder %s2119_s6, 2 }
  0x29   : > { %p50_p13 = por %p49_p7, %p48_p6  ;;  %s1878_s9 = sand.u32 1, %s1730_s14  }
  0x2a   : > { %s2121_s6 = smov (%p36_p10, %s2119_s6), 0  ;;  %s1345_s10 = sshll.u32 %s1878_s9, 3 }
  0x2b   : > { %2102 = sst [smem:[#allocation16_spill]] %s2121_s6  ;;  %s38_s11 = ssub.s32 %s1746_s18, %s2121_s6 }
  0x2c   : > { %p39_p0 = scmp.eq.s32.totalorder %s38_s11, 0  ;;  %s1346_s21 = sshll.u32 %s1746_s18, 7 }
  0x2d   : > { %s2103_s0 = sld [smem:[#allocation18_spill]]  ;;  %s168_s28 = scalar_lea.vmem [#allocation3], %s1345_s10 }
  0x2e   : > { %s175_s29 = sshll.u32 %s168_s28, 4  ;;  %p1894_p3 = pnand %p1442_p12, %p50_p13  ;;  %s176_s29 = int_to_ptr.vmem [resolvable:$true] %s175_s29 }
  0x2f   : > { %s1890_s30 = scalar_select %p39_p0, %s1730_s14, %s41_s7  }
  0x30   : > { %s182_s2 = sand.u32 1, %s1750_s19   ;;  %s1347_s6 = sshll.u32 %s1878_s9, 2 }
  0x31   : > { %2104 = sst [smem:[#allocation17_spill]] %s1890_s30  ;;  %s165_s11 = scalar_lea.sflag [#allocation4], %s1878_s9 }
  0x32   : > { %p1592_p5 = pneg %p1894_p3  ;;  %s1603_s5 = scalar_lea.vmem %s176_s29, 128 }
  0x33   : > { %s173_s27 = scalar_lea.hbm %s2103_s0, %s1346_s21  ;;  %p1604_p2 = scmp.ne.s32.totalorder %s176_s29, %s1603_s5 }
  0x34   : > { %s1755_s7 = smov [#allocation3]  }
  0x35   : > { %p1606_p6 = pnand %p1604_p2, %p1592_p5  ;;  %s1608_s10 = sshll.u32 %s1755_s7, 4  ;;  %s1609_s10 = int_to_ptr.vmem [resolvable:$false] %s1608_s10 }
  0x36   : > { %s1610_s21 = scalar_lea.vmem %s1609_s10, 256  ;;  %p1611_p9 = scmp.lt.s32.totalorder %s176_s29, %s1609_s10 }
  0x37   : > { %p1607_p7 = pneg %p1606_p6  ;;  %p1612_p10 = scmp.lt.s32.totalorder %s1610_s21, %s1603_s5 }
  0x39   : > { %p1613_p12 = por %p1612_p10, %p1611_p9 }
  0x3b   : > { %p1614_p13 = pnand %p1613_p12, %p1607_p7 }
  0x3d   : > { %1617 = shalt.err (!%p1614_p13)
}
  0x3e   : > { %1433 = dma.hbm_to_vmem [thread:$0]  (!%p1894_p3), %s173_s27, 128, %s176_s29, %s165_s11  }
  0x3f   : > { %s1348_s9 = sshll.u32 %s1746_s18, 6  ;;  %s186_s0 = scalar_lea.vmem [#allocation6], %s1347_s6 }
  0x40   : > { %s191_s28 = scalar_lea.hbm %s2087_s1, %s1348_s9  ;;  %s193_s17 = sshll.u32 %s186_s0, 4  ;;  %s194_s17 = int_to_ptr.vmem [resolvable:$true] %s193_s17 }
  0x41   : > { %s183_s7 = scalar_lea.sflag [#allocation7], %s182_s2  ;;  %s1631_s30 = scalar_lea.vmem %s194_s17, 64 }
  0x42   : > { %p1632_p0 = scmp.ne.s32.totalorder %s194_s17, %s1631_s30  ;;  %s1756_s5 = smov [#allocation6]  }
  0x43   : > { %s1636_s10 = sshll.u32 %s1756_s5, 4  ;;  %s1637_s10 = int_to_ptr.vmem [resolvable:$false] %s1636_s10 }
  0x44   : > { %p1634_p2 = pnand %p1632_p0, %p1592_p5  ;;  %s1638_s21 = scalar_lea.vmem %s1637_s10, 128 }
  0x45   : > { %p1639_p7 = scmp.lt.s32.totalorder %s194_s17, %s1637_s10  ;;  %p1640_p9 = scmp.lt.s32.totalorder %s1638_s21, %s1631_s30 }
  0x46   : > { %p1635_p6 = pneg %p1634_p2 }
  0x47   : > { %p1641_p10 = por %p1640_p9, %p1639_p7 }
  0x49   : > { %p1642_p12 = pnand %p1641_p10, %p1635_p6 }
  0x4b   : > { %1645 = shalt.err (!%p1642_p12)
}
  0x4c   : > { %1436 = dma.hbm_to_vmem [thread:$0]  (!%p1894_p3), %s191_s28, 64, %s194_s17, %s183_s7  }
  0x4d   : > { %202 = sbr.rel (%p1850_p8) target bundleno = 1462 (0x5b6), region = 32  ;;  %s1920_s0 = sand.u32 (!%p1850_p8), 1, %s1726_s13  }
  0x4e   : > { %s1350_s2 = sshll.u32 (!%p1850_p8), %s1920_s0, 3  ;;  %s205_s6 = scalar_lea.sflag (!%p1850_p8), [#allocation4], %s1920_s0 }
  0x4f   : > { %s208_s27 = scalar_lea.vmem (!%p1850_p8), [#allocation3], %s1350_s2 }
  0x52   : > { %1705 = dma.done.wait (%p1840_p4), %s205_s6, 128  }
  0x53   : > { %1707 = vsyncadd (%p1840_p4), %s205_s6, 4294967168  ;;  %s213_s17 = sand.u32 1, %s1831_s20   ;;  %s1351_s24 = sshll.u32 %s1920_s0, 2 }
  0x54   : > { %s214_s29 = scalar_lea.sflag [#allocation7], %s213_s17  ;;  %s1930_s30 = scalar_lea.vmem [#allocation6], %s1351_s24 }
  0x55   : > { %1709 = dma.done.wait (%p1840_p4), %s214_s29, 64  }
  0x56   : > { %1711 = vsyncadd (%p1840_p4), %s214_s29, 4294967232 }
  0x57   : > { %1713 = dma.done.wait (%p55_p1), [#allocation7], 1024  }
  0x58   : > { %1715 = vsyncadd (%p55_p1), [#allocation7], 4294966272  ;;  %s1940_s4 = scalar_lea.vmem [#allocation9], %s1350_s2  ;;  %p1354_p8 = scmp.ne.s32.totalorder %s1734_s15, 0 }
  0x5a   : > { %252 = sbr.rel (%p1354_p8) target bundleno = 97 (0x61), region = 48 }
  0x5f   : > { %v253_v0 = vld [vmem:[%s208_s27] sm:$0xff]  ;;  %vm254_vm0 = vcmask 261120  }
  0x60   : > { %255 = vst.msk [vmem:[#allocation2] sm:$0xff] %vm254_vm0, %v253_v0 }
  0x61 PF: > { %s1355_s11 = sshll.u32 %s1734_s15, 5  ;;  %v1757_v1 = vmov 0.0   ;;  %vm1758_vm1 = vmmov 0   ;;  %v1759_v4 = vmov 33   ;;  %vm264_vm2 = vcmask 261120   ;;  %s1760_s22 = smov 126  }
  0x62   : > { %1385 = vmatprep.subr.mxu0 %v1757_v1  ;;  %1393 = vmatprep.mubr.msk.f32.mxu0 %vm1758_vm1, %v1757_v1  ;;  %s258_s20 = scalar_lea.vmem [#allocation8], %s1355_s11  ;;  %vm422_vm3 = vcmask 1043456   ;;  %v1761_v11 = vmov 32   ;;  %s1762_s9 = smov 93   ;;  %v379_v19 = vlaneseq  ;;  %v256_v26 = vld [vmem:[%s1930_s30] sm:$0xf] }
  0x63   : > { %v262_v2 = vld [vmem:[%s258_s20 + $0x18] sm:$0xff]  ;;  %v261_v3 = vld [vmem:[%s258_s20 + $0x10] sm:$0xff]  ;;  %1524 = vset.pattern.permute.xlu1 %v1759_v4  ;;  %1396 = vmatprep.subr.mxu1 %v1757_v1  ;;  %v260_v5 = vld [vmem:[%s258_s20 + $0x8] sm:$0xff]  ;;  %s1763_s25 = smov 94   ;;  %s1764_s26 = smov 95   ;;  %vm394_vm6 = vcmp.gt.f32.partialorder %v256_v26, 0.5 }
  0x64   : > { %1386 = vmatpush3.msra.mxu0 %v262_v2  ;;  %1398 = vmatprep.mubr.msk.f32.mxu1 %vm1758_vm1, %v1757_v1  ;;  %v259_v6 = vld [vmem:[%s258_s20] sm:$0xff]  ;;  %s1765_s28 = smov 96   ;;  %v380_v21 = vshrl.u32 %v379_v19, 7  ;;  %vm396_vm7 = vcmask 27648   ;;  %s1766_s7 = smov 112   ;;  %vm418_vm9 = vcmask 31744  }
  0x65   : > { %1387 = vmatprep.subr.mxu0 %v1757_v1  ;;  %s1768_s5 = smov 16   ;;  %vm1203_vm11 = vcmask 130048   ;;  %p1367_p1 = scmp.ne.s32.totalorder %s1734_s15, 1 }
  0x66   : > { %1388 = vmatpush3.msra.mxu0 %v261_v3  ;;  %v381_v23 = vsub.s32 0, %v380_v21 }
  0x67   : > { %1389 = vmatprep.subr.mxu0 %v1757_v1  ;;  %v263_v7 = vld [vmem:[#allocation2] sm:$0xff] }
  0x68   : > { %1390 = vmatpush3.msra.mxu0 %v260_v5 }
  0x69   : > { %1391 = vmatprep.subr.mxu0 %v1757_v1 }
  0x6a   : > { %1392 = vmatpush3.msra.mxu0 %v259_v6 }
  0x6b   : > { %1394 = vmatmul.mubr.msk.f32.vlgmr.msra.gmra.mxu0 %vm264_vm2, %v263_v7  ;;  %1411 = vmatprep.subr.mxu0 %v1757_v1 }
  0x6c   : > { %1413 = vmatprep.mubr.msk.f32.mxu0 %vm1758_vm1, %v1757_v1 }
 0x12b   : > { %v1958_v8 = vpop.f32.mrf.mxu0 }
 0x12c   : > { %387 = vrot.lane.b32.xlu0 %v1958_v8, %s1760_s22  ;;  %807 = vperm.xlu1 %1524, %v1958_v8   ;;  %v1963_v9 = vrot.slane %v1958_v8, 4 }
 0x12d   : > { %v1395_v10 = vpop.f32.mrf.mxu0 }
 0x12e   : > { %1397 = vmatpush3.msk.msra.mxu1 %vm422_vm3, %v1963_v9 }
 0x12f   : > { %1401 = vmatprep.subr.mxu1 %v1757_v1 }
 0x130   : > { %1525 = vset.pattern.permute.xlu1 %v1761_v11  ;;  %771 = vrot.lane.b32.xlu0 %v1963_v9, %s1762_s9 }
 0x131   : > { %376 = vperm.xlu1 %1525, %v1958_v8  }
 0x134   : > { %340 = vrot.lane.b32.xlu0 %v1963_v9, %s1763_s25 }
 0x19e   : > { %v388_v12 = vpop.permute.xlu0 %387 }
 0x19f   : > { %v390_v15 = vadd.f32 %v388_v12, %v1958_v8 }
 0x1a1   : > { %v392_v16 = vmul.f32 0.01, %v390_v15  ;;  %vm391_vm4 = vcmp.ge.f32.partialorder %v390_v15, 0.0 }
 0x1a2   : > { %v772_v13 = vpop.permute.xlu0 %771 }
 0x1a3   : > { %774 = vxpose.xlu1.b32.start.end [1/1] (short) (narrow) %v772_v13, 8  ;;  %v1973_v17 = vsel %vm391_vm4, %v390_v15, %v392_v16 }
 0x1a4   : > { %v510_v18 = vrot.slane %v1973_v17, 4 }
 0x1a6   : > { %v341_v14 = vpop.permute.xlu0 %340 }
 0x1a7   : > { %343 = vxpose.xlu0.b32.start.end [1/1] (short) (narrow) %v341_v14, 8  ;;  %v808_v20 = vpop.permute.xlu1 %807 }
 0x1ac   : > { %v377_v22 = vpop.permute.xlu1 %376 }
 0x1c1   : > { %935 = vrot.lane.b32.xlu1 %v510_v18, %s1764_s26 }
 0x1d0   : > { %511 = vrot.lane.b32.xlu0 %v510_v18, %s1765_s28 }
 0x21f   : > { %v790_v24 = vpop.trf.xlu1 }
 0x220   : > { %v813_v25 = vrot.slane %v790_v24, %v381_v23 }
 0x222   : > { %v814_v27 = vadd.f32 %v813_v25, %v808_v20 }
 0x223   : > { %v359_v28 = vpop.trf.xlu0 }
 0x224   : > { %vm815_vm5 = vcmp.ge.f32.partialorder %v814_v27, 0.0  ;;  %v816_v29 = vmul.f32 0.01, %v814_v27  ;;  %v382_v30 = vrot.slane %v359_v28, %v381_v23 }
 0x226   : > { %v383_v31 = vadd.f32 %v382_v30, %v377_v22  ;;  %v817_v32 = vsel %vm815_vm5, %v814_v27, %v816_v29 }
 0x227   : > { %v1977_v33 = vsel %vm394_vm6, -9e+15, %v817_v32 }
 0x228   : > { %vm384_vm8 = vcmp.ge.f32.partialorder %v383_v31, 0.0  ;;  %v385_v34 = vmul.f32 0.01, %v383_v31  ;;  %v819_v35 = vsel %vm396_vm7, %v1977_v33, -inf }
 0x229   : > { %820 = vmax.xlane.f32.xlu0 %v819_v35  ;;  %v970_v48 = vrot.slane %v819_v35, 4 }
 0x22a   : > { %v386_v36 = vsel %vm384_vm8, %v383_v31, %v385_v34 }
 0x22b   : > { %v1981_v37 = vsel %vm394_vm6, -9e+15, %v386_v36  ;;  %v971_v50 = vmax.f32 %v819_v35, %v970_v48 }
 0x22c   : > { %v397_v38 = vsel %vm396_vm7, %v1981_v37, -inf }
 0x22d   : > { %398 = vmax.xlane.f32.xlu1 %v397_v38  ;;  %v546_v45 = vrot.slane %v397_v38, 4  ;;  %v972_v52 = vrot.slane %v971_v50, 2 }
 0x22f   : > { %v547_v46 = vmax.f32 %v397_v38, %v546_v45  ;;  %v973_v56 = vmax.f32 %v971_v50, %v972_v52 }
 0x231   : > { %v548_v47 = vrot.slane %v547_v46, 2  ;;  %v974_v59 = vrot.slane %v973_v56, 1 }
 0x233   : > { %v936_v40 = vpop.permute.xlu1 %935  ;;  %v549_v49 = vmax.f32 %v547_v46, %v548_v47  ;;  %v975_v61 = vmax.f32 %v973_v56, %v974_v59  ;;  %v1767_v47 = vmov 0  }
 0x235   : > { %v550_v51 = vrot.slane %v549_v49, 1 }
 0x237   : > { %v551_v53 = vmax.f32 %v549_v49, %v550_v51 }
 0x242   : > { %v512_v39 = vpop.permute.xlu0 %511 }
 0x256   : > { %514 = vxpose.xlu0.b32.start.end [1/1] (short) (narrow) %v512_v39, 8 }
 0x260   : > { %938 = vxpose.xlu1.b32.start.end [1/1] (short) (narrow) %v936_v40, 8 }
 0x27e   : > { %1526 = vset.pattern.permute.xlu1 %v1759_v4 }
 0x27f   : > { %1527 = vset.pattern.permute.xlu0 %v1761_v11 }
 0x2b2   : > { %v821_v41 = vpop.xlane.xlu0 %820 }
 0x2b3   : > { %v1988_v42 = vmax.f32 %v821_v41, %v1973_v17 }
 0x2b5   : > { %825 = vperm.xlu1 %1526, %v1988_v42  }
 0x2b6   : > { %v399_v43 = vpop.xlane.xlu1 %398 }
 0x2b7   : > { %v1992_v44 = vmax.f32 %v399_v43, %v1973_v17 }
 0x2b9   : > { %1029 = vrot.lane.b32.xlu1 %v1958_v8, %s1766_s7  ;;  %403 = vperm.xlu0 %1527, %v1992_v44  }
 0x2bd   : > { %840 = vrot.lane.b32.xlu0 %v1963_v9, %s1766_s7 }
 0x2d2   : > { %v530_v54 = vpop.trf.xlu0 }
 0x2d3   : > { %v552_v55 = vmax.f32 %v551_v53, %v530_v54 }
 0x2d5   : > { %v556_v57 = vrot.slane %v552_v55, %v381_v23  ;;  %v560_v6 = vsub.f32 %v530_v54, %v552_v55  ;;  %v409_v54 = vsub.f32 %v1973_v17, %v1992_v44  ;;  %v831_v55 = vsub.f32 %v1973_v17, %v1988_v42 }
 0x2d7   : > { %v557_v58 = vsub.f32 %v1981_v37, %v556_v57  ;;  %v561_v13 = vmul.f32 1.442695, %v560_v6  ;;  %v410_v56 = vmul.f32 1.442695, %v409_v54  ;;  %v832_v57 = vmul.f32 1.442695, %v831_v55 }
 0x2d9   : > { %v558_v60 = vmul.f32 1.442695, %v557_v58 }
 0x2db   : > { %1536 = vpow2.f32 %v558_v60 }
 0x2dc   : > { %v954_v62 = vpop.trf.xlu1 }
 0x2dd   : > { %v976_v63 = vmax.f32 %v975_v61, %v954_v62 }
 0x2df   : > { %v980_v0 = vrot.slane %v976_v63, %v381_v23  ;;  %v984_v10 = vsub.f32 %v954_v62, %v976_v63 }
 0x2e1   : > { %v981_v2 = vsub.f32 %v1977_v33, %v980_v0  ;;  %v985_v14 = vmul.f32 1.442695, %v984_v10 }
 0x2e3   : > { %v982_v3 = vmul.f32 1.442695, %v981_v2 }
 0x2e5   : > { %1538 = vpow2.f32 %v982_v3 }
 0x2e6   : > { %1540 = vpow2.f32 %v561_v13 }
 0x2e7   : > { %1542 = vpow2.f32 %v985_v14 }
 0x2e8   : > { %v1537_v5 = vpop.eup %1536 }
 0x2e9   : > { %v563_v7 = vsel %vm396_vm7, %v1537_v5, 0.0  ;;  %573 = vxpose.xlu1.b32.start.end [1/1] (short) (narrow) %v1537_v5, 8 }
 0x2ea   : > { %v564_v9 = vrot.slane %v563_v7, 4 }
 0x2ec   : > { %v565_v12 = vadd.f32 %v564_v9, %v563_v7 }
 0x2ee   : > { %v566_v15 = vrot.slane %v565_v12, 2 }
 0x2f0   : > { %v567_v19 = vadd.f32 %v566_v15, %v565_v12 }
 0x2f2   : > { %v1539_v16 = vpop.eup %1538  ;;  %v568_v22 = vrot.slane %v567_v19, 1 }
 0x2f3   : > { %v987_v18 = vsel %vm396_vm7, %v1539_v16, 0.0  ;;  %997 = vxpose.xlu0.b32.start.end [1/1] (short) (narrow) %v1539_v16, 8  ;;  %v1541_v27 = vpop.eup %1540 }
 0x2f4   : > { %v988_v20 = vrot.slane %v987_v18, 4  ;;  %v569_v25 = vadd.f32 %v568_v22, %v567_v19  ;;  %v1543_v29 = vpop.eup %1542 }
 0x2f6   : > { %v989_v21 = vadd.f32 %v988_v20, %v987_v18  ;;  %v570_v30 = vadd.f32 %v1541_v27, %v569_v25 }
 0x2f8   : > { %v990_v23 = vrot.slane %v989_v21, 2 }
 0x2fa   : > { %v991_v24 = vadd.f32 %v990_v23, %v989_v21 }
 0x2fc   : > { %v992_v26 = vrot.slane %v991_v24, 1 }
 0x2fe   : > { %v993_v28 = vadd.f32 %v992_v26, %v991_v24 }
 0x300   : > { %v994_v31 = vadd.f32 %v1543_v29, %v993_v28 }
 0x302   : > { %1544 = vrcp.f32 %v994_v31 }
 0x303   : > { %1546 = vrcp.f32 %v570_v30 }
 0x30f   : > { %v2003_v32 = vpop.eup %1544 }
 0x310   : > { %v1144_v34 = vmul.f32 %v2003_v32, %v1543_v29  ;;  %v1547_v35 = vpop.eup %1546 }
 0x311   : > { %v718_v36 = vmul.f32 %v1547_v35, %v1541_v27 }
 0x312   : > { %1145 = vxpose.xlu0.b32.start.end [1/1] (short) (narrow) %v1144_v34, 8 }
 0x316   : > { %719 = vxpose.xlu0.b32.start.end [1/1] (short) (narrow) %v718_v36, 8 }
 0x330   : > { %v826_v38 = vpop.permute.xlu1 %825 }
 0x331   : > { %v828_v39 = vsub.f32 %v1977_v33, %v826_v38 }
 0x333   : > { %v829_v40 = vmul.f32 1.442695, %v828_v39 }
 0x334   : > { %v404_v41 = vpop.permute.xlu0 %403  ;;  %v1030_v43 = vpop.permute.xlu1 %1029 }
 0x335   : > { %1548 = vpow2.f32 %v829_v40  ;;  %v406_v45 = vsub.f32 %v1981_v37, %v404_v41  ;;  %1412 = vmatpush3.msk.msra.mxu0 %vm422_vm3, %v1030_v43 }
 0x337   : > { %v407_v46 = vmul.f32 1.442695, %v406_v45 }
 0x338   : > { %v841_v51 = vpop.permute.xlu0 %840 }
 0x339   : > { %1550 = vpow2.f32 %v407_v46 }
 0x33a   : > { %1552 = vpow2.f32 %v410_v56 }
 0x33b   : > { %1554 = vpow2.f32 %v832_v57 }
 0x33f   : > { %1529 = vset.pattern.permute.xlu0 %v1767_v47 }
 0x342   : > { %v1549_v48 = vpop.eup %1548 }
 0x343   : > { %v834_v49 = vsel %vm396_vm7, %v1549_v48, 0.0 }
 0x344   : > { %835 = vadd.xlane.f32.xlu1 %v834_v49 }
 0x346   : > { %v1551_v50 = vpop.eup %1550 }
 0x347   : > { %1399 = vmatmul.mubr.msk.f32.vlgmr.msra.gmra.mxu1 %vm418_vm9, %v1551_v50  ;;  %v412_v33 = vsel %vm396_vm7, %v1551_v50, 0.0  ;;  %v1553_v59 = vpop.eup %1552 }
 0x348   : > { %1402 = vmatpush3.msk.msra.mxu1 %vm422_vm3, %v1958_v8  ;;  %413 = vadd.xlane.f32.xlu0 %v412_v33  ;;  %v1555_v61 = vpop.eup %1554 }
 0x349   : > { %1403 = vmatprep.mubr.msk.f32.mxu1 %vm1758_vm1, %v1757_v1  ;;  %1406 = vmatprep.subr.mxu1 %v1757_v1 }
 0x365   : > { %v589_v37 = vpop.trf.xlu1 }
 0x366   : > { %1404 = vmatmul.mubr.msk.f32.vlgmr.msra.gmra.mxu1 %vm418_vm9, %v589_v37 }
 0x367   : > { %1407 = vmatpush3.msk.msra.mxu1 %vm422_vm3, %v841_v51  ;;  %1408 = vmatprep.mubr.msk.f32.mxu1 %vm1758_vm1, %v1757_v1 }
 0x36a   : > { %1409 = vmatmul.mubr.msk.f32.vlgmr.msra.gmra.mxu1 %vm418_vm9, %v1549_v48 }
 0x36f   : > { %v1013_v52 = vpop.trf.xlu0 }
 0x370   : > { %1414 = vmatmul.mubr.msk.f32.vlgmr.msra.gmra.mxu0 %vm418_vm9, %v1013_v52 }
 0x377   : > { %680 = vxpose.xlu1.b32.start.end [1/1] (short) (narrow) %v1547_v35, 8 }
 0x38e   : > { %v1161_v53 = vpop.trf.xlu0 }
 0x392   : > { %v735_v1 = vpop.trf.xlu0 }
 0x395   : > { %1528 = vset.pattern.permute.xlu1 %v1767_v47 }
 0x396   : > { %1179 = vperm.xlu1 %1528, %v1161_v53  }
 0x39a   : > { %1531 = vset.pattern.permute.xlu1 %v1761_v11 }
 0x3cd   : > { %v836_v58 = vpop.xlane.xlu1 %835 }
 0x3ce   : > { %v837_v63 = vadd.f32 %v1555_v61, %v836_v58 }
 0x3d1   : > { %v414_v60 = vpop.xlane.xlu0 %413 }
 0x3d2   : > { %v415_v62 = vadd.f32 %v1553_v59, %v414_v60 }
 0x3d4   : > { %1556 = vrcp.f32 %v415_v62 }
 0x3d5   : > { %1558 = vrcp.f32 %v837_v63 }
 0x3e1   : > { %v1557_v0 = vpop.eup %1556 }
 0x3e2   : > { %v501_v2 = vmul.f32 %v1557_v0, %v1553_v59  ;;  %v1559_v3 = vpop.eup %1558 }
 0x3e3   : > { %v923_v44 = vmul.f32 %v1559_v3, %v1555_v61 }
 0x3e4   : > { %504 = vperm.xlu1 %1531, %v501_v2  }
 0x3e8   : > { %1532 = vset.pattern.permute.xlu1 %v1759_v4 }
 0x3e9   : > { %926 = vperm.xlu1 %1532, %v923_v44  }
 0x3f3   : > { %v696_v17 = vpop.trf.xlu1 }
 0x3f4   : > { %714 = vperm.xlu0 %1529, %v696_v17  }
 0x3f8   : > { %1530 = vset.pattern.permute.xlu0 %v1761_v11 }
 0x3f9   : > { %497 = vperm.xlu0 %1530, %v1557_v0  }
 0x3fd   : > { %1534 = vset.pattern.permute.xlu0 %v1767_v47 }
 0x407   : > { %v491_v42 = vpop.f32.mrf.mxu1 }
 0x409   : > { %v1400_v5 = vpop.f32.mrf.mxu1 }
 0x411   : > { %v1180_v14 = vpop.permute.xlu1 %1179 }
 0x412   : > { %1106 = vxpose.xlu1.b32.start.end [1/1] (short) (narrow) %v2003_v32, 8  ;;  %v1181_v11 = vrot.slane %v1180_v14, 4 }
 0x414   : > { %v1183_v18 = vmul.f32 %v1181_v11, %v1958_v8 }
 0x416   : > { %v1185_v20 = vrot.slane %v1183_v18, 4 }
 0x426   : > { %v676_v6 = vpop.f32.mrf.mxu1 }
 0x428   : > { %v1405_v7 = vpop.f32.mrf.mxu1 }
 0x42a   : > { %v913_v9 = vpop.f32.mrf.mxu1 }
 0x42c   : > { %v1410_v10 = vpop.f32.mrf.mxu1 }
 0x430   : > { %1533 = vset.pattern.permute.xlu1 %v1767_v47  ;;  %v1102_v12 = vpop.f32.mrf.mxu0 }
 0x431   : > { %753 = vperm.xlu1 %1533, %v735_v1  }
 0x432   : > { %v1415_v13 = vpop.f32.mrf.mxu0 }
 0x435   : > { %1535 = vset.pattern.permute.xlu1 %v1759_v4 }
 0x436   : > { %919 = vperm.xlu1 %1535, %v1559_v3  }
 0x45f   : > { %v505_v15 = vpop.permute.xlu1 %504 }
 0x460   : > { %v507_v29 = vmul.f32 %v505_v15, %v1958_v8 }
 0x464   : > { %v927_v16 = vpop.permute.xlu1 %926 }
 0x465   : > { %v929_v21 = vmul.f32 %v927_v16, %v1958_v8 }
 0x46f   : > { %v715_v22 = vpop.permute.xlu0 %714 }
 0x470   : > { %v717_v26 = vmul.f32 %v715_v22, %v676_v6 }
 0x474   : > { %v498_v4 = vpop.permute.xlu0 %497 }
 0x475   : > { %v500_v27 = vmul.f32 %v498_v4, %v491_v42 }
 0x477   : > { %v508_v31 = vadd.f32 %v507_v29, %v500_v27 }
 0x48e   : > { %v1122_v19 = vpop.trf.xlu1 }
 0x48f   : > { %1140 = vperm.xlu0 %1534, %v1122_v19  }
 0x493   : > { %1186 = vrot.lane.b32.xlu0 %v1185_v20, %s1766_s7 }
 0x497   : > { %931 = vrot.lane.b32.xlu0 %v929_v21, %s1766_s7 }
 0x4ac   : > { %v754_v23 = vpop.permute.xlu1 %753 }
 0x4ad   : > { %v755_v24 = vrot.slane %v754_v23, 4 }
 0x4af   : > { %v757_v25 = vmul.f32 %v755_v24, %v1958_v8 }
 0x4b1   : > { %v759_v28 = vrot.slane %v757_v25, 4  ;;  %v920_v38 = vpop.permute.xlu1 %919 }
 0x4b2   : > { %v922_v41 = vmul.f32 %v920_v38, %v913_v9 }
 0x4b3   : > { %v761_v30 = vadd.f32 %v759_v28, %v717_v26 }
 0x4b5   : > { %v763_v32 = vrot.slane %v761_v30, 4 }
 0x4b7   : > { %v765_v34 = vsel %vm422_vm3, %v508_v31, %v763_v32 }
 0x4b8   : > { %v767_v33 = vmul.f32 1.442695, %v765_v34  ;;  %vm766_vm12 = vcmp.gt.f32.partialorder %v765_v34, 0.0 }
 0x50a   : > { %v1141_v35 = vpop.permute.xlu0 %1140 }
 0x50b   : > { %v1143_v36 = vmul.f32 %v1141_v35, %v1102_v12 }
 0x50e   : > { %v1187_v39 = vpop.permute.xlu0 %1186 }
 0x50f   : > { %v1189_v40 = vadd.f32 %v1187_v39, %v1143_v36 }
 0x511   : > { %v1191_v45 = vrot.slane %v1189_v40, 4 }
 0x512   : > { %v932_v43 = vpop.permute.xlu0 %931 }
 0x513   : > { %v934_v46 = vadd.f32 %v932_v43, %v922_v41 }
 0x515   : > { %v1193_v47 = vsel %vm422_vm3, %v934_v46, %v1191_v45 }
 0x516   : > { %v1195_v48 = vmul.f32 1.442695, %v1193_v47  ;;  %vm1194_vm10 = vcmp.gt.f32.partialorder %v1193_v47, 0.0 }
 0x518   : > { %1560 = vpow2.f32 %v1195_v48 }
 0x519   : > { %1562 = vpow2.f32 %v767_v33 }
 0x525   : > { %v1561_v49 = vpop.eup %1560 }
 0x526   : > { %v1366_v8 = vadd.f32 -1.0, %v1561_v49  ;;  %v1563_v37 = vpop.eup %1562 }
 0x527   : > { %v1361_v51 = vadd.f32 -1.0, %v1563_v37 }
 0x528   : > { %v1198_v50 = vsel %vm1194_vm10, %v1193_v47, %v1366_v8 }
 0x529   : > { %1200 = vrot.lane.b32.xlu1 %v1198_v50, %s1768_s5  ;;  %v770_v52 = vsel %vm766_vm12, %v765_v34, %v1361_v51 }
 0x599   : > { %1209 = sbr.rel (%p1367_p1) target bundleno = 1439 (0x59f), region = 52 }
 0x59b   : > { %v1201_v53 = vpop.permute.xlu1 %1200 }
 0x59c   : > { %v1204_v54 = vsel %vm1203_vm11, %v770_v52, %v1201_v53 }
 0x59d   : > { %1205 = vst.msk [vmem:[#allocation2] sm:$0xff] %vm264_vm2, %v1204_v54 }
 0x59e   : > { %1210 = vst.msk [vmem:[%s1940_s4] sm:$0xff] %vm264_vm2, %v1204_v54 }
 0x59f PF: > { %s1369_s10 = sshll.u32 %s1738_s16, 7  ;;  %s1225_s27 = sshll.u32 %s1940_s4, 4  ;;  %s1226_s27 = int_to_ptr.vmem [resolvable:$true] %s1225_s27 }
 0x5a0   : > { %s1223_s6 = scalar_lea.hbm %s2089_s3, %s1369_s10  ;;  %s1212_s17 = scalar_lea.sflag [#allocation5], %s1920_s0 }
 0x5a1   : > { %s1646_s24 = scalar_lea.vmem %s1226_s27, 128  ;;  %s1769_s15 = smov [#allocation9]  }
 0x5a2   : > { %p1647_p4 = scmp.ne.s32.totalorder %s1226_s27, %s1646_s24  ;;  %s1650_s29 = sshll.u32 %s1769_s15, 4  ;;  %s1651_s29 = int_to_ptr.vmem [resolvable:$false] %s1650_s29 }
 0x5a3   : > { %s1652_s30 = scalar_lea.vmem %s1651_s29, 256  ;;  %p1653_p13 = scmp.lt.s32.totalorder %s1226_s27, %s1651_s29 }
 0x5a4   : > { %p1648_p3 = pnand %p1647_p4, %p1872_p11  ;;  %p1654_p0 = scmp.lt.s32.totalorder %s1652_s30, %s1646_s24 }
 0x5a6   : > { %p1649_p5 = pneg %p1648_p3  ;;  %p1655_p2 = por %p1654_p0, %p1653_p13 }
 0x5a8   : > { %p1656_p6 = pnand %p1655_p2, %p1649_p5 }
 0x5aa   : > { %1659 = shalt.err (!%p1656_p6)
}
 0x5ab   : > { %s1660_s16 = scalar_lea.hbm %s1223_s6, 128  ;;  %s1664_s11 = scalar_lea.hbm %s2089_s3, 256 }
 0x5ac   : > { %p1661_p7 = scmp.ne.s32.totalorder %s1223_s6, %s1660_s16  ;;  %p1665_p12 = scmp.lt.s32.totalorder %s1223_s6, %s2089_s3 }
 0x5ad   : > { %p1666_p8 = scmp.lt.s32.totalorder %s1664_s11, %s1660_s16 }
 0x5ae   : > { %p1662_p9 = pnand %p1661_p7, %p1872_p11 }
 0x5af   : > { %p1667_p1 = por %p1666_p8, %p1665_p12 }
 0x5b0   : > { %p1663_p10 = pneg %p1662_p9 }
 0x5b2   : > { %p1668_p4 = pnand %p1667_p1, %p1663_p10 }
 0x5b4   : > { %1671 = shalt.err (!%p1668_p4)
}
 0x5b5   : > { %1424 = dma.vmem_to_hbm [thread:$0]  (%p1872_p11), %s1226_s27, 128, %s1223_s6, %s1212_s17  }
 0x5b6 PF: > { %p1444_p3 = scmp.ge.s32.totalorder %s1750_s19, 2  ;;  %s1237_s9 = sand.u32 1, %s1722_s12  }
 0x5b7   : > { %p2106_p5 = scmp.ne.s32.totalorder %s2096_s23, 0  ;;  %s1238_s25 = scalar_lea.sflag [#allocation5], %s1237_s9 }
 0x5b9   : > { %p1438_p13 = pnand %p1444_p3, %p2106_p5 }
 0x5bb   : > { %p1439_p0 = pneg %p1438_p13 }
 0x5bd   : > { %1717 = dma.done.wait (%p1439_p0), %s1238_s25, 128  }
 0x5be   : > { %1719 = vsyncadd (%p1439_p0), %s1238_s25, 4294967168  ;;  %s22_s19 = sadd.s32 1, %s1750_s19   ;;  %s2107_s26 = sld [smem:[#allocation17_spill]] }
 0x5bf   : > { %p19_p2 = scmp.ge.s32.totalorder %s22_s19, 6   ;;  %s2108_s15 = sld [smem:[#allocation14_spill]] }
 0x5c0   : > { %s2109_s17 = sld [smem:[#allocation15_spill]]  ;;  %s2111_s12 = smov %s1726_s13 }
 0x5c1   : > { %s2110_s8 = sld [smem:[#allocation16_spill]]  ;;  %s2112_s13 = smov %s1730_s14 }
 0x5c2   : > { %s2114_s16 = smov %s1746_s18 }
 0x5c3   :  { %21 = sbr.rel (!%p19_p2) target bundleno = 12 (0xc), region = 103 }
 0x5c4   : > { %s2113_s14 = smov %s2107_s26 }
 0x5c7   : > { %s2115_s18 = smov %s2110_s8 }
 0x5c8   :  { %1243 = vsyncpa [#allocation4], 1 }
 0x5c9   :  { %1245 = vsyncpa [#allocation4 + $0x1], 1 }
 0x5ca   :  { %1246 = vsyncpa [#allocation7], 1 }
 0x5cb   :  { %1248 = vsyncpa [#allocation7 + $0x1], 1 }
 0x5cc   :  { %1249 = vsyncpa [#allocation5], 1 }
 0x5cd   :  { %1251 = vsyncpa [#allocation5 + $0x1], 1 }

</bundles_post_ra>
